<compile_context>
chip_gen: v5e
topology: v5e:2x2
jax: 0.10.0
libtpu: 0.0.40
codegen_flags: <defaults>
</compile_context>

<pallas_src>
import jax
import jax.numpy as jnp
from jax.experimental import pallas as pl
from jax.experimental.pallas import tpu as pltpu

_BN_EPS = 1e-5


def _basic_block_kernel(x_ref, w1_ref, w2_ref, up_ref, dn_ref,
                        gmean_ref, gamma_ref, beta_ref, o_ref):
    """Fused conv3x3 -> bn1 -> relu -> conv3x3 -> bn1 -> (+x) -> relu.

    All refs are lane-dense 2D:
      x_ref, o_ref : (N*H, W*C)
      w*_ref       : (W*C, 3*W*C)  banded block weights (kw taps + W-padding folded in)
      up/dn_ref    : (N*H, N*H)    row-shift matrices for kh = -1 / +1 (H-padding folded in)
      gmean_ref    : (W*C, W*C)    per-channel group-mean matrix (scaled by 1/(N*H*W))
      gamma/beta   : (1, W*C)      bn1 affine params tiled over W
    """
    L = x_ref.shape[1]                       # W*C lanes

    x = x_ref[...].astype(jnp.float32)
    up = up_ref[...]
    dn = dn_ref[...]
    gmean = gmean_ref[...]
    gamma = gamma_ref[...]
    beta = beta_ref[...]

    def conv3x3(t, w_ref):
        # One wide MXU matmul produces all three kh "bands" at once; two tiny
        # shift-matrix matmuls apply the +-1 row offsets with height padding.
        # (For v6e/v7x production: cast `t` and the weight to bf16 here, keep
        #  preferred_element_type=f32, to double effective MXU throughput.)
        y = jnp.dot(t, w_ref[...], preferred_element_type=jnp.float32)  # (R, 3L)
        return (jnp.dot(up, y[:, :L], preferred_element_type=jnp.float32)
                + y[:, L:2 * L]
                + jnp.dot(dn, y[:, 2 * L:], preferred_element_type=jnp.float32))

    def bn_relu(t, *, relu):
        # Single-pass BatchNorm2d training-mode stats (biased variance), kept
        # lane-dense: row sums -> per-(w,c) sums, then one small matmul folds
        # the W lane-groups of each channel and divides by N*H*W.
        s = jnp.sum(t, axis=0, keepdims=True)          # (1, L)
        ss = jnp.sum(t * t, axis=0, keepdims=True)     # (1, L)
        tots = jnp.dot(jnp.concatenate([s, ss], axis=0), gmean,
                       preferred_element_type=jnp.float32)   # (2, L): E[x], E[x^2]
        mean = tots[0:1, :]
        var = tots[1:2, :] - mean * mean                     # single-pass variance (f32)
        out = (t - mean) * (jax.lax.rsqrt(var + _BN_EPS) * gamma) + beta
        return jnp.maximum(out, 0.0) if relu else out

    h1 = bn_relu(conv3x3(x, w1_ref), relu=True)        # relu(bn1(conv1(x)))
    h2 = bn_relu(conv3x3(h1, w2_ref), relu=False)      # bn1(conv2(.))  (bn1 reused)
    o_ref[...] = jnp.maximum(h2 + x, 0.0).astype(o_ref.dtype)


def _banded_conv_weight(w_oihw, width):
    """(Cout, Cin, 3, 3) OIHW -> (W*Cin, 3*W*Cout) lane-dense banded weight.

    Column block kh holds B_kh with
      B_kh[w*Cin + i, v*Cout + o] = sum_kw w[o, i, kh, kw] * [w == v + kw - 1],
    i.e. the kw taps, the width shift and the width zero-padding are folded
    into the weight, so each conv is a single matmul per kh band.
    """
    cout, cin = w_oihw.shape[0], w_oihw.shape[1]
    w_t = jnp.transpose(w_oihw, (2, 3, 1, 0))                      # (kh, kw, Cin, Cout)
    wi = jnp.arange(width)
    band = (wi[None, :, None] ==
            wi[None, None, :] + jnp.arange(3)[:, None, None] - 1)   # (kw, w, v)
    band = band.astype(w_oihw.dtype)
    blocks = jnp.einsum("xwv,kxio->kwivo", band, w_t)               # (kh, w, i, v, o)
    blocks = blocks.reshape(3, width * cin, width * cout)
    return jnp.concatenate([blocks[0], blocks[1], blocks[2]], axis=1)


def _row_shift_matrices(n, h):
    """0/1 matrices applying the kh = -1 / +1 row shifts with height padding."""
    r = jnp.arange(n * h)
    in_img = r % h
    up = ((r[:, None] - 1 == r[None, :]) & (in_img >= 1)[:, None])      # out[r] += Y0[r-1]
    dn = ((r[:, None] + 1 == r[None, :]) & (in_img <= h - 2)[:, None])  # out[r] += Y2[r+1]
    return up.astype(jnp.float32), dn.astype(jnp.float32)


def _group_mean_matrix(width, c, count):
    """(W*C, W*C) matrix averaging each channel over its W lane slots and all rows."""
    lane = jnp.arange(width * c)
    same_channel = (lane[:, None] % c) == (lane[None, :] % c)
    return same_channel.astype(jnp.float32) / float(count)


def basic_block_nhwc(x_nhwc, conv1_w, conv2_w, bn1_gamma, bn1_beta):
    """Fused BasicBlock on NHWC input (stride=1, downsample=None, dropout=0)."""
    n, h, w, c = x_nhwc.shape
    cout = conv1_w.shape[0]
    assert conv1_w.shape[1] == c and cout == c, \
        "downsample=None requires in_channels == out_channels"

    x2 = x_nhwc.reshape(n * h, w * c)                    # lane-dense (rows, W*C)
    w1b = _banded_conv_weight(conv1_w, w)
    w2b = _banded_conv_weight(conv2_w, w)
    up, dn = _row_shift_matrices(n, h)
    gmean = _group_mean_matrix(w, c, n * h * w)
    gamma2 = jnp.tile(bn1_gamma, w).reshape(1, w * c)    # lane-dense affine params
    beta2 = jnp.tile(bn1_beta, w).reshape(1, w * c)

    # Single grid point: training-mode BN needs global (N,H,W) statistics and
    # the whole working set is a few hundred KiB of VMEM at this scale.
    out2 = pl.pallas_call(
        _basic_block_kernel,
        out_shape=jax.ShapeDtypeStruct((n * h, w * c), x_nhwc.dtype),
        in_specs=[pl.BlockSpec(memory_space=pltpu.MemorySpace.VMEM)] * 8,
        out_specs=pl.BlockSpec(memory_space=pltpu.MemorySpace.VMEM),
    )(x2, w1b, w2b, up, dn, gmean, gamma2, beta2)

    return out2.reshape(n, h, w, c)


def basic_block(x_nchw, conv1_w, conv2_w, bn1_gamma, bn1_beta):
    """PyTorch-layout adapter (NCHW in / NCHW out).  Between consecutive fused
    blocks prefer basic_block_nhwc to avoid the two extra HBM transpose passes."""
    x_nhwc = jnp.transpose(x_nchw, (0, 2, 3, 1))
    out = basic_block_nhwc(x_nhwc, conv1_w, conv2_w, bn1_gamma, bn1_beta)
    return jnp.transpose(out, (0, 3, 1, 2))


def _reference(x, w1, w2, gamma, beta):
    """Pure-JAX reference in NCHW, mirrors the PyTorch forward."""
    def conv(t, w):
        return jax.lax.conv_general_dilated(
            t, w, window_strides=(1, 1), padding=((1, 1), (1, 1)),
            dimension_numbers=("NCHW", "OIHW", "NCHW"),
            precision=jax.lax.Precision.HIGHEST)

    def bn(t):
        mean = jnp.mean(t, axis=(0, 2, 3), keepdims=True)
        var = jnp.mean((t - mean) ** 2, axis=(0, 2, 3), keepdims=True)
        g = gamma.reshape(1, -1, 1, 1)
        b = beta.reshape(1, -1, 1, 1)
        return (t - mean) * jax.lax.rsqrt(var + _BN_EPS) * g + b

    out = jnp.maximum(bn(conv(x, w1)), 0.0)
    out = bn(conv(out, w2))
    return jnp.maximum(out + x, 0.0)


if __name__ == "__main__":
    key = jax.random.PRNGKey(0)
    k1, k2, k3, k4, k5 = jax.random.split(key, 5)

    N, C, H, W = 2, 8, 16, 16   # in_channels == out_channels; W*C = 128 (lane-dense)
    x = jax.random.normal(k1, (N, C, H, W), jnp.float32)
    conv1_w = 0.1 * jax.random.normal(k2, (C, C, 3, 3), jnp.float32)
    conv2_w = 0.1 * jax.random.normal(k3, (C, C, 3, 3), jnp.float32)
    bn1_gamma = 1.0 + 0.1 * jax.random.normal(k4, (C,), jnp.float32)
    bn1_beta = 0.1 * jax.random.normal(k5, (C,), jnp.float32)
    # NOTE: bn2 parameters exist in __init__ but the forward applies bn1 twice;
    # dropout=0 (default) -> identity.

    out = jax.block_until_ready(
        basic_block(x, conv1_w, conv2_w, bn1_gamma, bn1_beta))

    ref = _reference(x, conv1_w, conv2_w, bn1_gamma, bn1_beta)
    assert out.shape == ref.shape and out.dtype == ref.dtype
    max_err = float(jnp.max(jnp.abs(out - ref)))
    assert jnp.allclose(out, ref, atol=2e-2, rtol=2e-2), f"max_err={max_err}"

    print("KERNEL_OK")
</pallas_src>

<mosaic_0001>
module attributes {stable_mosaic.version = 11 : i64} {
  func.func @_basic_block_kernel(%arg0: memref<32x128xf32, #tpu.memory_space<vmem>>, %arg1: memref<128x384xf32, #tpu.memory_space<vmem>>, %arg2: memref<128x384xf32, #tpu.memory_space<vmem>>, %arg3: memref<32x32xf32, #tpu.memory_space<vmem>>, %arg4: memref<32x32xf32, #tpu.memory_space<vmem>>, %arg5: memref<128x128xf32, #tpu.memory_space<vmem>>, %arg6: memref<1x128xf32, #tpu.memory_space<vmem>>, %arg7: memref<1x128xf32, #tpu.memory_space<vmem>>, %arg8: memref<32x128xf32, #tpu.memory_space<vmem>>) attributes {dimension_semantics = [], scalar_prefetch = 0 : i64, scratch_operands = 0 : i64, tpu.core_type = #tpu.core_type<tc>} {
    %c0 = arith.constant 0 : index
    %c0_0 = arith.constant 0 : index
    %0 = vector.load %arg0[%c0, %c0_0] : memref<32x128xf32, #tpu.memory_space<vmem>>, vector<32x128xf32>
    %c0_1 = arith.constant 0 : index
    %c0_2 = arith.constant 0 : index
    %1 = vector.load %arg3[%c0_1, %c0_2] : memref<32x32xf32, #tpu.memory_space<vmem>>, vector<32x32xf32>
    %c0_3 = arith.constant 0 : index
    %c0_4 = arith.constant 0 : index
    %2 = vector.load %arg4[%c0_3, %c0_4] : memref<32x32xf32, #tpu.memory_space<vmem>>, vector<32x32xf32>
    %c0_5 = arith.constant 0 : index
    %c0_6 = arith.constant 0 : index
    %3 = vector.load %arg5[%c0_5, %c0_6] : memref<128x128xf32, #tpu.memory_space<vmem>>, vector<128x128xf32>
    %c0_7 = arith.constant 0 : index
    %c0_8 = arith.constant 0 : index
    %4 = vector.load %arg6[%c0_7, %c0_8] : memref<1x128xf32, #tpu.memory_space<vmem>>, vector<1x128xf32>
    %c0_9 = arith.constant 0 : index
    %c0_10 = arith.constant 0 : index
    %5 = vector.load %arg7[%c0_9, %c0_10] : memref<1x128xf32, #tpu.memory_space<vmem>>, vector<1x128xf32>
    %c0_11 = arith.constant 0 : index
    %c0_12 = arith.constant 0 : index
    %6 = vector.load %arg1[%c0_11, %c0_12] : memref<128x384xf32, #tpu.memory_space<vmem>>, vector<128x384xf32>
    %cst = arith.constant dense<0.000000e+00> : vector<32x384xf32>
    %7 = tpu.matmul %0, %6, %cst {dimension_numbers = #tpu.dot_dimension_numbers<[1], [0], [0], [1], [0, 0, 1, 1], [], []>} : vector<32x128xf32>, vector<128x384xf32>, vector<32x384xf32> -> vector<32x384xf32>
    %8 = vector.extract_strided_slice %7 {offsets = [0, 0], sizes = [32, 128], strides = [1, 1]} : vector<32x384xf32> to vector<32x128xf32>
    %cst_13 = arith.constant dense<0.000000e+00> : vector<32x128xf32>
    %9 = tpu.matmul %1, %8, %cst_13 {dimension_numbers = #tpu.dot_dimension_numbers<[1], [0], [0], [1], [0, 0, 1, 1], [], []>} : vector<32x32xf32>, vector<32x128xf32>, vector<32x128xf32> -> vector<32x128xf32>
    %10 = vector.extract_strided_slice %7 {offsets = [0, 128], sizes = [32, 128], strides = [1, 1]} : vector<32x384xf32> to vector<32x128xf32>
    %11 = arith.addf %9, %10 : vector<32x128xf32>
    %12 = vector.extract_strided_slice %7 {offsets = [0, 256], sizes = [32, 128], strides = [1, 1]} : vector<32x384xf32> to vector<32x128xf32>
    %cst_14 = arith.constant dense<0.000000e+00> : vector<32x128xf32>
    %13 = tpu.matmul %2, %12, %cst_14 {dimension_numbers = #tpu.dot_dimension_numbers<[1], [0], [0], [1], [0, 0, 1, 1], [], []>} : vector<32x32xf32>, vector<32x128xf32>, vector<32x128xf32> -> vector<32x128xf32>
    %14 = arith.addf %11, %13 : vector<32x128xf32>
    %cst_15 = arith.constant dense<0.000000e+00> : vector<128xf32>
    %15 = vector.multi_reduction <add>, %14, %cst_15 [0] : vector<32x128xf32> to vector<128xf32>
    %16 = vector.shape_cast %15 : vector<128xf32> to vector<1x128xf32>
    %17 = arith.mulf %14, %14 : vector<32x128xf32>
    %cst_16 = arith.constant dense<0.000000e+00> : vector<128xf32>
    %18 = vector.multi_reduction <add>, %17, %cst_16 [0] : vector<32x128xf32> to vector<128xf32>
    %19 = vector.shape_cast %18 : vector<128xf32> to vector<1x128xf32>
    %20 = tpu.concatenate %16, %19 in 0 : vector<1x128xf32>, vector<1x128xf32> -> vector<2x128xf32>
    %cst_17 = arith.constant dense<0.000000e+00> : vector<2x128xf32>
    %21 = tpu.matmul %20, %3, %cst_17 {dimension_numbers = #tpu.dot_dimension_numbers<[1], [0], [0], [1], [0, 0, 1, 1], [], []>} : vector<2x128xf32>, vector<128x128xf32>, vector<2x128xf32> -> vector<2x128xf32>
    %22 = vector.extract_strided_slice %21 {offsets = [0, 0], sizes = [1, 128], strides = [1, 1]} : vector<2x128xf32> to vector<1x128xf32>
    %23 = vector.extract_strided_slice %21 {offsets = [1, 0], sizes = [1, 128], strides = [1, 1]} : vector<2x128xf32> to vector<1x128xf32>
    %24 = arith.mulf %22, %22 : vector<1x128xf32>
    %25 = arith.subf %23, %24 : vector<1x128xf32>
    %26 = vector.broadcast %22 : vector<1x128xf32> to vector<32x128xf32>
    %27 = arith.subf %14, %26 : vector<32x128xf32>
    %cst_18 = arith.constant 9.99999974E-6 : f32
    %28 = vector.broadcast %cst_18 : f32 to vector<1x128xf32>
    %29 = arith.addf %25, %28 : vector<1x128xf32>
    %30 = math.rsqrt %29 : vector<1x128xf32>
    %31 = arith.mulf %30, %4 : vector<1x128xf32>
    %32 = vector.broadcast %31 : vector<1x128xf32> to vector<32x128xf32>
    %33 = arith.mulf %27, %32 : vector<32x128xf32>
    %34 = vector.broadcast %5 : vector<1x128xf32> to vector<32x128xf32>
    %35 = arith.addf %33, %34 : vector<32x128xf32>
    %cst_19 = arith.constant 0.000000e+00 : f32
    %36 = vector.broadcast %cst_19 : f32 to vector<32x128xf32>
    %37 = arith.maximumf %35, %36 : vector<32x128xf32>
    %c0_20 = arith.constant 0 : index
    %c0_21 = arith.constant 0 : index
    %38 = vector.load %arg2[%c0_20, %c0_21] : memref<128x384xf32, #tpu.memory_space<vmem>>, vector<128x384xf32>
    %cst_22 = arith.constant dense<0.000000e+00> : vector<32x384xf32>
    %39 = tpu.matmul %37, %38, %cst_22 {dimension_numbers = #tpu.dot_dimension_numbers<[1], [0], [0], [1], [0, 0, 1, 1], [], []>} : vector<32x128xf32>, vector<128x384xf32>, vector<32x384xf32> -> vector<32x384xf32>
    %40 = vector.extract_strided_slice %39 {offsets = [0, 0], sizes = [32, 128], strides = [1, 1]} : vector<32x384xf32> to vector<32x128xf32>
    %cst_23 = arith.constant dense<0.000000e+00> : vector<32x128xf32>
    %41 = tpu.matmul %1, %40, %cst_23 {dimension_numbers = #tpu.dot_dimension_numbers<[1], [0], [0], [1], [0, 0, 1, 1], [], []>} : vector<32x32xf32>, vector<32x128xf32>, vector<32x128xf32> -> vector<32x128xf32>
    %42 = vector.extract_strided_slice %39 {offsets = [0, 128], sizes = [32, 128], strides = [1, 1]} : vector<32x384xf32> to vector<32x128xf32>
    %43 = arith.addf %41, %42 : vector<32x128xf32>
    %44 = vector.extract_strided_slice %39 {offsets = [0, 256], sizes = [32, 128], strides = [1, 1]} : vector<32x384xf32> to vector<32x128xf32>
    %cst_24 = arith.constant dense<0.000000e+00> : vector<32x128xf32>
    %45 = tpu.matmul %2, %44, %cst_24 {dimension_numbers = #tpu.dot_dimension_numbers<[1], [0], [0], [1], [0, 0, 1, 1], [], []>} : vector<32x32xf32>, vector<32x128xf32>, vector<32x128xf32> -> vector<32x128xf32>
    %46 = arith.addf %43, %45 : vector<32x128xf32>
    %cst_25 = arith.constant dense<0.000000e+00> : vector<128xf32>
    %47 = vector.multi_reduction <add>, %46, %cst_25 [0] : vector<32x128xf32> to vector<128xf32>
    %48 = vector.shape_cast %47 : vector<128xf32> to vector<1x128xf32>
    %49 = arith.mulf %46, %46 : vector<32x128xf32>
    %cst_26 = arith.constant dense<0.000000e+00> : vector<128xf32>
    %50 = vector.multi_reduction <add>, %49, %cst_26 [0] : vector<32x128xf32> to vector<128xf32>
    %51 = vector.shape_cast %50 : vector<128xf32> to vector<1x128xf32>
    %52 = tpu.concatenate %48, %51 in 0 : vector<1x128xf32>, vector<1x128xf32> -> vector<2x128xf32>
    %cst_27 = arith.constant dense<0.000000e+00> : vector<2x128xf32>
    %53 = tpu.matmul %52, %3, %cst_27 {dimension_numbers = #tpu.dot_dimension_numbers<[1], [0], [0], [1], [0, 0, 1, 1], [], []>} : vector<2x128xf32>, vector<128x128xf32>, vector<2x128xf32> -> vector<2x128xf32>
    %54 = vector.extract_strided_slice %53 {offsets = [0, 0], sizes = [1, 128], strides = [1, 1]} : vector<2x128xf32> to vector<1x128xf32>
    %55 = vector.extract_strided_slice %53 {offsets = [1, 0], sizes = [1, 128], strides = [1, 1]} : vector<2x128xf32> to vector<1x128xf32>
    %56 = arith.mulf %54, %54 : vector<1x128xf32>
    %57 = arith.subf %55, %56 : vector<1x128xf32>
    %58 = vector.broadcast %54 : vector<1x128xf32> to vector<32x128xf32>
    %59 = arith.subf %46, %58 : vector<32x128xf32>
    %cst_28 = arith.constant 9.99999974E-6 : f32
    %60 = vector.broadcast %cst_28 : f32 to vector<1x128xf32>
    %61 = arith.addf %57, %60 : vector<1x128xf32>
    %62 = math.rsqrt %61 : vector<1x128xf32>
    %63 = arith.mulf %62, %4 : vector<1x128xf32>
    %64 = vector.broadcast %63 : vector<1x128xf32> to vector<32x128xf32>
    %65 = arith.mulf %59, %64 : vector<32x128xf32>
    %66 = vector.broadcast %5 : vector<1x128xf32> to vector<32x128xf32>
    %67 = arith.addf %65, %66 : vector<32x128xf32>
    %68 = arith.addf %67, %0 : vector<32x128xf32>
    %cst_29 = arith.constant 0.000000e+00 : f32
    %69 = vector.broadcast %cst_29 : f32 to vector<32x128xf32>
    %70 = arith.maximumf %68, %69 : vector<32x128xf32>
    %c0_30 = arith.constant 0 : index
    %c0_31 = arith.constant 0 : index
    %71 = vector.load %arg8[%c0_30, %c0_31] : memref<32x128xf32, #tpu.memory_space<vmem>>, vector<32x128xf32>
    tpu.vector_store %arg8[%c0_30, %c0_31], %70 {strides = array<i32>} : memref<32x128xf32, #tpu.memory_space<vmem>>, vector<32x128xf32>,
    return
  }
}

</mosaic_0001>

<bundles_post_ra>
// kernel: tpu_custom_call.1
= control target key start
LH: loop header
LB: loop body
LE: loop exit
PB: predicated region body
PF: predicated region fallthrough
CT: control target
= control target key end

     0   :  { %13 = vsyncpa [#allocation3], 0  ;;  %s1255_s0 = inlined_call_operand.hbm [shape: f32[32,128], index: 0, kind: input, shape index: {}]   ;;  %s1256_s1 = inlined_call_operand.hbm [shape: f32[128,384], index: 1, kind: input, shape index: {}]   ;;  %s1257_s2 = inlined_call_operand.hbm [shape: f32[128,384], index: 2, kind: input, shape index: {}]   ;;  %s1258_s3 = inlined_call_operand.hbm [shape: f32[32,32], index: 3, kind: input, shape index: {}]   ;;  %s1259_s4 = inlined_call_operand.hbm [shape: f32[32,32], index: 4, kind: input, shape index: {}]   ;;  %s1260_s5 = inlined_call_operand.hbm [shape: f32[128,128], index: 5, kind: input, shape index: {}]   ;;  %s1261_s6 = inlined_call_operand.vmem [shape: f32[1,128], index: 6, kind: input, shape index: {}]   ;;  %s1262_s7 = inlined_call_operand.vmem [shape: f32[1,128], index: 7, kind: input, shape index: {}]   ;;  %s1263_s8 = inlined_call_operand.hbm [shape: f32[32,128], index: 8, kind: output, shape index: {}]  }
   0x1   :  { %14 = vsyncpa [#allocation6], 0 }
   0x2   :  { %15 = vsyncpa [#allocation9], 0 }
   0x3   :  { %16 = vsyncpa [#allocation12], 0  ;;  %s35_s29 = sshll.u32 %s1256_s1, 4  ;;  %s36_s29 = int_to_ptr.hbm [resolvable:$true] %s35_s29 }
   0x4   :  { %17 = vsyncpa [#allocation4], 0  ;;  %s981_s30 = smov [#allocation5]   ;;  %s982_s10 = smov 384  }
   0x5   :  { %s37_s9 = sshll.u32 %s981_s30, 4  ;;  %s983_s11 = smov 24   ;;  %s38_s9 = int_to_ptr.vmem [resolvable:$true] %s37_s9 }
   0x6   :  { %43 = dma.hbm_to_vmem [thread:$0]  %s36_s29, 6144, %s38_s9, [#allocation6], %s982_s10, %s982_s10, %s983_s11  }
   0x7   :  { %s61_s14 = sshll.u32 %s1258_s3, 4  ;;  %s984_s15 = smov [#allocation8]   ;;  %s62_s14 = int_to_ptr.hbm [resolvable:$true] %s61_s14 }
   0x8   :  { %s63_s16 = sshll.u32 %s984_s15, 4  ;;  %s22_s19 = sshll.u32 %s1255_s0, 4  ;;  %s64_s16 = int_to_ptr.vmem [resolvable:$true] %s63_s16  ;;  %s23_s19 = int_to_ptr.hbm [resolvable:$true] %s22_s19 }
   0x9   :  { %s985_s1 = smov 128   ;;  %s986_s20 = smov 8  }
   0xa   :  { %69 = dma.hbm_to_vmem [thread:$0]  %s62_s14, 512, %s64_s16, [#allocation9], %s985_s1, %s985_s1, %s986_s20  }
   0xb   :  { %s48_s23 = sshll.u32 %s1257_s2, 4  ;;  %s987_s3 = smov [#allocation2]   ;;  %s49_s23 = int_to_ptr.hbm [resolvable:$true] %s48_s23 }
   0xc   :  { %s24_s24 = sshll.u32 %s987_s3, 4  ;;  %s988_s0 = smov [#allocation7]   ;;  %s25_s24 = int_to_ptr.vmem [resolvable:$true] %s24_s24 }
   0xd   :  { %30 = dma.hbm_to_vmem [thread:$0]  %s23_s19, 512, %s25_s24, [#allocation3], %s985_s1, %s985_s1, %s986_s20  }
   0xe   :  { %s50_s25 = sshll.u32 %s988_s0, 4  ;;  %s74_s28 = sshll.u32 %s1259_s4, 4  ;;  %s51_s25 = int_to_ptr.vmem [resolvable:$true] %s50_s25  ;;  %s75_s28 = int_to_ptr.hbm [resolvable:$true] %s74_s28 }
   0xf   :  { %56 = dma.hbm_to_vmem [thread:$0]  %s49_s23, 6144, %s51_s25, [#allocation6], %s982_s10, %s982_s10, %s983_s11  }
  0x10   :  { %s87_s2 = sshll.u32 %s1260_s5, 4  ;;  %s989_s9 = smov [#allocation10]   ;;  %s88_s2 = int_to_ptr.hbm [resolvable:$true] %s87_s2 }
  0x11   :  { %s76_s12 = sshll.u32 %s989_s9, 4  ;;  %s990_s13 = smov [#allocation11]   ;;  %s77_s12 = int_to_ptr.vmem [resolvable:$true] %s76_s12 }
  0x12   :  { %82 = dma.hbm_to_vmem [thread:$0]  %s75_s28, 512, %s77_s12, [#allocation9], %s985_s1, %s985_s1, %s986_s20  }
  0x13   :  { %s89_s14 = sshll.u32 %s990_s13, 4  ;;  %s90_s14 = int_to_ptr.vmem [resolvable:$true] %s89_s14 }
  0x14   :  { %95 = dma.hbm_to_vmem [thread:$0]  %s88_s2, 2048, %s90_s14, [#allocation12], %s985_s1, %s985_s1, %s986_s20  }
  0x15   :  { %971 = dma.done.wait [#allocation3], 512  }
  0x16   :  { %972 = vsyncadd [#allocation3], 4294966784 }
  0x17   :  { %973 = dma.done.wait [#allocation6], 12288  }
  0x18   :  { %974 = vsyncadd [#allocation6], 4294955008 }
  0x19   :  { %975 = dma.done.wait [#allocation9], 1024  }
  0x1a   :  { %976 = vsyncadd [#allocation9], 4294966272 }
  0x1b   :  { %977 = dma.done.wait [#allocation12], 2048  }
  0x1c   :  { %978 = vsyncadd [#allocation12], 4294965248  ;;  %v199_v0 = vld [vmem:[#allocation5 + $0x168] sm:$0xff]  ;;  %v201_v1 = vld [vmem:[#allocation5 + $0x178] sm:$0xff]  ;;  %vm289_vm0 = vcmask 261120   ;;  %vm398_vm1 = vcmask 1040384  }
  0x1d   :  { %v196_v2 = vld [vmem:[#allocation5 + $0x150] sm:$0xff]  ;;  %202 = vmatpush.msra.mxu0 %v199_v0  ;;  %260 = vmatpush.msra.mxu2 %v201_v1  ;;  %v198_v3 = vld [vmem:[#allocation5 + $0x160] sm:$0xff]  ;;  %v193_v4 = vld [vmem:[#allocation5 + $0x138] sm:$0xff]  ;;  %s750_s17 = sshll.u32 %s1263_s8, 4  ;;  %s751_s17 = int_to_ptr.hbm [resolvable:$true] %s750_s17 }
  0x1e   :  { %v195_v5 = vld [vmem:[#allocation5 + $0x148] sm:$0xff]  ;;  %v190_v6 = vld [vmem:[#allocation5 + $0x120] sm:$0xff]  ;;  %v192_v7 = vld [vmem:[#allocation5 + $0x130] sm:$0xff] }
  0x1f   :  { %203 = vmatpush.msra.mxu0 %v196_v2  ;;  %261 = vmatpush.msra.mxu2 %v198_v3  ;;  %v187_v8 = vld [vmem:[#allocation5 + $0x108] sm:$0xff]  ;;  %v189_v9 = vld [vmem:[#allocation5 + $0x118] sm:$0xff]  ;;  %v184_v10 = vld [vmem:[#allocation5 + $0xf0] sm:$0xff] }
  0x20   :  { %v186_v11 = vld [vmem:[#allocation5 + $0x100] sm:$0xff]  ;;  %v181_v12 = vld [vmem:[#allocation5 + $0xd8] sm:$0xff]  ;;  %v183_v13 = vld [vmem:[#allocation5 + $0xe8] sm:$0xff] }
  0x21   :  { %204 = vmatpush.msra.mxu0 %v193_v4  ;;  %262 = vmatpush.msra.mxu2 %v195_v5  ;;  %v178_v14 = vld [vmem:[#allocation5 + $0xc0] sm:$0xff]  ;;  %v180_v15 = vld [vmem:[#allocation5 + $0xd0] sm:$0xff]  ;;  %v175_v16 = vld [vmem:[#allocation5 + $0xa8] sm:$0xff] }
  0x22   :  { %v177_v17 = vld [vmem:[#allocation5 + $0xb8] sm:$0xff]  ;;  %v172_v18 = vld [vmem:[#allocation5 + $0x90] sm:$0xff]  ;;  %v174_v19 = vld [vmem:[#allocation5 + $0xa0] sm:$0xff] }
  0x23   :  { %205 = vmatpush.msra.mxu0 %v190_v6  ;;  %263 = vmatpush.msra.mxu2 %v192_v7  ;;  %v169_v20 = vld [vmem:[#allocation5 + $0x78] sm:$0xff]  ;;  %v171_v21 = vld [vmem:[#allocation5 + $0x88] sm:$0xff]  ;;  %v166_v22 = vld [vmem:[#allocation5 + $0x60] sm:$0xff] }
  0x24   :  { %v168_v23 = vld [vmem:[#allocation5 + $0x70] sm:$0xff]  ;;  %v163_v24 = vld [vmem:[#allocation5 + $0x48] sm:$0xff]  ;;  %v165_v25 = vld [vmem:[#allocation5 + $0x58] sm:$0xff] }
  0x25   :  { %206 = vmatpush.msra.mxu0 %v187_v8  ;;  %264 = vmatpush.msra.mxu2 %v189_v9  ;;  %v160_v26 = vld [vmem:[#allocation5 + $0x30] sm:$0xff]  ;;  %v162_v27 = vld [vmem:[#allocation5 + $0x40] sm:$0xff]  ;;  %v157_v28 = vld [vmem:[#allocation5 + $0x18] sm:$0xff] }
  0x26   :  { %v159_v29 = vld [vmem:[#allocation5 + $0x28] sm:$0xff]  ;;  %v154_v30 = vld [vmem:[#allocation5] sm:$0xff]  ;;  %v156_v31 = vld [vmem:[#allocation5 + $0x10] sm:$0xff] }
  0x27   :  { %207 = vmatpush.msra.mxu0 %v184_v10  ;;  %265 = vmatpush.msra.mxu2 %v186_v11  ;;  %v1067_v32 = vld [vmem:[#allocation2] sm:$0xff]  ;;  %v1071_v33 = vld [vmem:[#allocation2 + $0x8] sm:$0xff]  ;;  %v1075_v34 = vld [vmem:[#allocation2 + $0x10] sm:$0xff] }
  0x28   :  { %v1079_v35 = vld [vmem:[#allocation2 + $0x18] sm:$0xff]  ;;  %v200_v36 = vld [vmem:[#allocation5 + $0x170] sm:$0xff]  ;;  %v194_v38 = vld [vmem:[#allocation5 + $0x140] sm:$0xff] }
  0x29   :  { %208 = vmatpush.msra.mxu0 %v181_v12  ;;  %266 = vmatpush.msra.mxu2 %v183_v13  ;;  %v197_v37 = vld [vmem:[#allocation5 + $0x158] sm:$0xff]  ;;  %v191_v39 = vld [vmem:[#allocation5 + $0x128] sm:$0xff]  ;;  %v188_v40 = vld [vmem:[#allocation5 + $0x110] sm:$0xff] }
  0x2a   :  { %231 = vmatpush.msra.mxu1 %v200_v36  ;;  %v185_v41 = vld [vmem:[#allocation5 + $0xf8] sm:$0xff]  ;;  %v182_v42 = vld [vmem:[#allocation5 + $0xe0] sm:$0xff]  ;;  %v179_v43 = vld [vmem:[#allocation5 + $0xc8] sm:$0xff] }
  0x2b   :  { %209 = vmatpush.msra.mxu0 %v178_v14  ;;  %267 = vmatpush.msra.mxu2 %v180_v15  ;;  %v176_v44 = vld [vmem:[#allocation5 + $0xb0] sm:$0xff]  ;;  %v173_v45 = vld [vmem:[#allocation5 + $0x98] sm:$0xff]  ;;  %v170_v46 = vld [vmem:[#allocation5 + $0x80] sm:$0xff] }
  0x2c   :  { %232 = vmatpush.msra.mxu1 %v197_v37  ;;  %v167_v47 = vld [vmem:[#allocation5 + $0x68] sm:$0xff]  ;;  %v164_v48 = vld [vmem:[#allocation5 + $0x50] sm:$0xff]  ;;  %v161_v50 = vld [vmem:[#allocation5 + $0x38] sm:$0xff] }
  0x2d   :  { %210 = vmatpush.msra.mxu0 %v175_v16  ;;  %268 = vmatpush.msra.mxu2 %v177_v17  ;;  %v158_v51 = vld [vmem:[#allocation5 + $0x20] sm:$0xff]  ;;  %v155_v52 = vld [vmem:[#allocation5 + $0x8] sm:$0xff]  ;;  %v1095_v62 = vld [vmem:[#allocation8 + $0x10] sm:$0xff] }
  0x2e   :  { %233 = vmatpush.msra.mxu1 %v194_v38  ;;  %v1086_v59 = vld [vmem:[#allocation8] sm:$0xff]  ;;  %v1091_v61 = vld [vmem:[#allocation8 + $0x8] sm:$0xff]  ;;  %v1099_v63 = vld [vmem:[#allocation8 + $0x18] sm:$0xff] }
  0x2f   :  { %211 = vmatpush.msra.mxu0 %v172_v18  ;;  %269 = vmatpush.msra.mxu2 %v174_v19  ;;  %v1103_v0 = vld [vmem:[#allocation10] sm:$0xff]  ;;  %v1107_v1 = vld [vmem:[#allocation10 + $0x8] sm:$0xff]  ;;  %v1111_v2 = vld [vmem:[#allocation10 + $0x10] sm:$0xff] }
  0x30   :  { %234 = vmatpush.msra.mxu1 %v191_v39  ;;  %v1115_v3 = vld [vmem:[#allocation10 + $0x18] sm:$0xff]  ;;  %v1121_v7 = vld [vmem:[#allocation11 + $0x70] sm:$0xff]  ;;  %v1125_v9 = vld [vmem:[#allocation11 + $0x68] sm:$0xff] }
  0x31   :  { %212 = vmatpush.msra.mxu0 %v169_v20  ;;  %270 = vmatpush.msra.mxu2 %v171_v21  ;;  %v1119_v6 = vld [vmem:[#allocation11 + $0x78] sm:$0xff]  ;;  %v1128_v10 = vld [vmem:[#allocation11 + $0x60] sm:$0xff]  ;;  %v1133_v12 = vld [vmem:[#allocation11 + $0x50] sm:$0xff] }
  0x32   :  { %235 = vmatpush.msra.mxu1 %v188_v40  ;;  %v1131_v11 = vld [vmem:[#allocation11 + $0x58] sm:$0xff]  ;;  %v1137_v15 = vld [vmem:[#allocation11 + $0x48] sm:$0xff]  ;;  %v1140_v16 = vld [vmem:[#allocation11 + $0x40] sm:$0xff] }
  0x33   :  { %213 = vmatpush.msra.mxu0 %v166_v22  ;;  %271 = vmatpush.msra.mxu2 %v168_v23  ;;  %v1143_v17 = vld [vmem:[#allocation11 + $0x38] sm:$0xff]  ;;  %v1146_v18 = vld [vmem:[#allocation11 + $0x30] sm:$0xff]  ;;  %v1149_v21 = vld [vmem:[#allocation11 + $0x28] sm:$0xff] }
  0x34   :  { %236 = vmatpush.msra.mxu1 %v185_v41  ;;  %v1151_v22 = vld [vmem:[#allocation11 + $0x20] sm:$0xff]  ;;  %v1154_v23 = vld [vmem:[#allocation11 + $0x18] sm:$0xff] }
  0x35   :  { %214 = vmatpush.msra.mxu0 %v163_v24  ;;  %272 = vmatpush.msra.mxu2 %v165_v25  ;;  %v1157_v24 = vld [vmem:[#allocation11 + $0x10] sm:$0xff]  ;;  %v1160_v25 = vld [vmem:[#allocation11 + $0x8] sm:$0xff] }
  0x36   :  { %237 = vmatpush.msra.mxu1 %v182_v42 }
  0x37   :  { %215 = vmatpush.msra.mxu0 %v160_v26  ;;  %273 = vmatpush.msra.mxu2 %v162_v27  ;;  %v1163_v27 = vld [vmem:[#allocation11] sm:$0xff] }
  0x38   :  { %238 = vmatpush.msra.mxu1 %v179_v43 }
  0x39   :  { %216 = vmatpush.msra.mxu0 %v157_v28  ;;  %274 = vmatpush.msra.mxu2 %v159_v29 }
  0x3a   :  { %239 = vmatpush.msra.mxu1 %v176_v44 }
  0x3b   :  { %217 = vmatpush.msra.mxu0 %v154_v30  ;;  %275 = vmatpush.msra.mxu2 %v156_v31 }
  0x3c   :  { %218 = vmatmul.f32.vlgmr.msra.gmra.mxu0 %v1067_v32  ;;  %276 = vmatmul.f32.vlgmr.msra.gmra.mxu2 %v1067_v32 }
  0x3d   :  { %240 = vmatpush.msra.mxu1 %v173_v45  ;;  %400 = vmatpush.msrb.mxu0 %v1119_v6 }
  0x3f   :  { %241 = vmatpush.msra.mxu1 %v170_v46  ;;  %401 = vmatpush.msrb.mxu0 %v1121_v7 }
  0x41   :  { %242 = vmatpush.msra.mxu1 %v167_v47  ;;  %402 = vmatpush.msrb.mxu0 %v1125_v9 }
  0x43   :  { %243 = vmatpush.msra.mxu1 %v164_v48  ;;  %403 = vmatpush.msrb.mxu0 %v1128_v10 }
  0x44   :  { %221 = vmatmul.f32.gmra.mxu0 %v1071_v33  ;;  %279 = vmatmul.f32.gmra.mxu2 %v1071_v33 }
  0x45   :  { %244 = vmatpush.msra.mxu1 %v161_v50  ;;  %404 = vmatpush.msrb.mxu0 %v1131_v11 }
  0x47   :  { %245 = vmatpush.msra.mxu1 %v158_v51  ;;  %405 = vmatpush.msrb.mxu0 %v1133_v12 }
  0x49   :  { %246 = vmatpush.msra.mxu1 %v155_v52  ;;  %406 = vmatpush.msrb.mxu0 %v1137_v15 }
  0x4a   :  { %247 = vmatmul.f32.vlgmr.msra.gmra.mxu1 %v1067_v32 }
  0x4b   :  { %407 = vmatpush.msrb.mxu0 %v1140_v16 }
  0x4c   :  { %224 = vmatmul.f32.gmra.mxu0 %v1075_v34  ;;  %282 = vmatmul.f32.gmra.mxu2 %v1075_v34 }
  0x4d   :  { %408 = vmatpush.msrb.mxu0 %v1143_v17 }
  0x4f   :  { %409 = vmatpush.msrb.mxu0 %v1146_v18 }
  0x51   :  { %410 = vmatpush.msrb.mxu0 %v1149_v21 }
  0x52   :  { %250 = vmatmul.f32.gmra.mxu1 %v1071_v33 }
  0x53   :  { %411 = vmatpush.msrb.mxu0 %v1151_v22 }
  0x54   :  { %227 = vmatmul.f32.gmra.mxu0 %v1079_v35  ;;  %285 = vmatmul.f32.gmra.mxu2 %v1079_v35 }
  0x55   :  { %412 = vmatpush.msrb.mxu0 %v1154_v23 }
  0x57   :  { %413 = vmatpush.msrb.mxu0 %v1157_v24 }
  0x59   :  { %414 = vmatpush.msrb.mxu0 %v1160_v25 }
  0x5a   :  { %253 = vmatmul.f32.gmra.mxu1 %v1075_v34 }
  0x5b   :  { %415 = vmatpush.msrb.mxu0 %v1163_v27 }
  0x62   :  { %256 = vmatmul.f32.gmra.mxu1 %v1079_v35 }
  0xb9   :  { %v219_v49 = vpop.f32.mrf.mxu0 }
  0xbf   :  { %v277_v53 = vpop.f32.mrf.mxu2 }
  0xc1   :  { %v222_v54 = vpop.f32.mrf.mxu0 }
  0xc7   :  { %v280_v55 = vpop.f32.mrf.mxu2  ;;  %v248_v13 = vpop.f32.mrf.mxu1 }
  0xc9   :  { %v225_v56 = vpop.f32.mrf.mxu0 }
  0xcf   :  { %v283_v57 = vpop.f32.mrf.mxu2  ;;  %v251_v19 = vpop.f32.mrf.mxu1 }
  0xd1   :  { %v228_v58 = vpop.f32.mrf.mxu0 }
  0xd2   :  { %314 = vmatpush.msra.mxu3 %v228_v58 }
  0xd4   :  { %315 = vmatpush.msra.mxu3 %v225_v56 }
  0xd6   :  { %316 = vmatpush.msra.mxu3 %v222_v54 }
  0xd7   :  { %v286_v60 = vpop.f32.mrf.mxu2  ;;  %v254_v28 = vpop.f32.mrf.mxu1 }
  0xd8   :  { %317 = vmatpush.msra.mxu3 %v219_v49 }
  0xd9   :  { %766 = vmatmul.msk.f32.vlgmr.msra.gmra.mxu3 %vm289_vm0, %v1086_v59 }
  0xda   :  { %355 = vmatpush.msrb.mxu3 %v286_v60 }
  0xdc   :  { %356 = vmatpush.msrb.mxu3 %v283_v57 }
  0xde   :  { %357 = vmatpush.msrb.mxu3 %v280_v55 }
  0xdf   :  { %v257_v40 = vpop.f32.mrf.mxu1 }
  0xe0   :  { %358 = vmatpush.msrb.mxu3 %v277_v53 }
  0xe1   :  { %767 = vmatmul.msk.f32.gmra.mxu3 %vm289_vm0, %v1091_v61 }
  0xe9   :  { %768 = vmatmul.msk.f32.gmra.mxu3 %vm289_vm0, %v1095_v62 }
  0xf1   :  { %769 = vmatmul.msk.f32.gmra.mxu3 %vm289_vm0, %v1099_v63 }
  0xf9   :  { %770 = vmatmul.msk.f32.vlgmr.msrb.gmra.mxu3 %vm289_vm0, %v1103_v0 }
 0x101   :  { %771 = vmatmul.msk.f32.gmra.mxu3 %vm289_vm0, %v1107_v1 }
 0x109   :  { %772 = vmatmul.msk.f32.gmra.mxu3 %vm289_vm0, %v1111_v2 }
 0x111   :  { %773 = vmatmul.msk.f32.gmra.mxu3 %vm289_vm0, %v1115_v3 }
 0x15c   :  { %v319_v4 = vpop.f32.mrf.mxu3 }
 0x15d   :  { %v320_v31 = vadd.f32 %v319_v4, %v248_v13 }
 0x164   :  { %v322_v5 = vpop.f32.mrf.mxu3 }
 0x165   :  { %v323_v29 = vadd.f32 %v322_v5, %v251_v19 }
 0x16c   :  { %v325_v8 = vpop.f32.mrf.mxu3 }
 0x16d   :  { %v326_v36 = vadd.f32 %v325_v8, %v254_v28  ;;  %v507_v28 = vld [vmem:[#allocation7 + $0x170] sm:$0xff] }
 0x16e   :  { %538 = vmatpush.msrb.mxu2 %v507_v28  ;;  %v473_v28 = vld [vmem:[#allocation7 + $0x60] sm:$0xff] }
 0x174   :  { %v328_v14 = vpop.f32.mrf.mxu3 }
 0x175   :  { %v329_v42 = vadd.f32 %v328_v14, %v257_v40  ;;  %v500_v40 = vld [vmem:[#allocation7 + $0x138] sm:$0xff] }
 0x17c   :  { %v360_v20 = vpop.f32.mrf.mxu3 }
 0x17d   :  { %v1169_v38 = vadd.f32 %v360_v20, %v320_v31  ;;  %v504_v31 = vld [vmem:[#allocation7 + $0x158] sm:$0xff] }
 0x17e   :  { %539 = vmatpush.msrb.mxu2 %v504_v31  ;;  %v470_v31 = vld [vmem:[#allocation7 + $0x48] sm:$0xff] }
 0x17f   :  { %v385_v43 = vmul.f32 %v1169_v38, %v1169_v38 }
 0x184   :  { %v363_v26 = vpop.f32.mrf.mxu3 }
 0x185   :  { %v1167_v37 = vadd.f32 %v363_v26, %v323_v29  ;;  %v506_v26 = vld [vmem:[#allocation7 + $0x168] sm:$0xff]  ;;  %v508_v29 = vld [vmem:[#allocation7 + $0x178] sm:$0xff] }
 0x186   :  { %509 = vmatpush.msrb.mxu1 %v506_v26  ;;  %567 = vmatpush.msra.mxu3 %v508_v29  ;;  %v478_v26 = vld [vmem:[#allocation7 + $0x88] sm:$0xff] }
 0x187   :  { %v386_v41 = vmul.f32 %v1167_v37, %v1167_v37  ;;  %v376_v44 = vadd.f32 %v1167_v37, %v1169_v38  ;;  %v474_v29 = vld [vmem:[#allocation7 + $0x68] sm:$0xff] }
 0x189   :  { %v389_v47 = vadd.f32 %v386_v41, %v385_v43  ;;  %v501_v41 = vld [vmem:[#allocation7 + $0x140] sm:$0xff] }
 0x18a   :  { %540 = vmatpush.msrb.mxu2 %v501_v41  ;;  %v497_v43 = vld [vmem:[#allocation7 + $0x120] sm:$0xff]  ;;  %v467_v41 = vld [vmem:[#allocation7 + $0x30] sm:$0xff] }
 0x18c   :  { %v366_v30 = vpop.f32.mrf.mxu3 }
 0x18d   :  { %v1171_v39 = vadd.f32 %v366_v30, %v326_v36  ;;  %v503_v30 = vld [vmem:[#allocation7 + $0x150] sm:$0xff]  ;;  %v505_v36 = vld [vmem:[#allocation7 + $0x160] sm:$0xff] }
 0x18e   :  { %510 = vmatpush.msrb.mxu1 %v503_v30  ;;  %568 = vmatpush.msra.mxu3 %v505_v36  ;;  %v475_v30 = vld [vmem:[#allocation7 + $0x70] sm:$0xff] }
 0x18f   :  { %v387_v45 = vmul.f32 %v1171_v39, %v1171_v39  ;;  %v377_v48 = vadd.f32 %v376_v44, %v1171_v39  ;;  %v498_v44 = vld [vmem:[#allocation7 + $0x128] sm:$0xff]  ;;  %v471_v36 = vld [vmem:[#allocation7 + $0x50] sm:$0xff] }
 0x190   :  { %511 = vmatpush.msrb.mxu1 %v500_v40  ;;  %541 = vmatpush.msrb.mxu2 %v498_v44  ;;  %v472_v40 = vld [vmem:[#allocation7 + $0x58] sm:$0xff] }
 0x191   :  { %v390_v50 = vadd.f32 %v389_v47, %v387_v45  ;;  %v499_v45 = vld [vmem:[#allocation7 + $0x130] sm:$0xff] }
 0x192   :  { %512 = vmatpush.msrb.mxu1 %v497_v43  ;;  %v495_v47 = vld [vmem:[#allocation7 + $0x110] sm:$0xff]  ;;  %v469_v43 = vld [vmem:[#allocation7 + $0x40] sm:$0xff] }
 0x193   :  { %542 = vmatpush.msrb.mxu2 %v495_v47 }
 0x194   :  { %v369_v46 = vpop.f32.mrf.mxu3 }
 0x195   :  { %v1182_v49 = vadd.f32 %v369_v46, %v329_v42  ;;  %v502_v42 = vld [vmem:[#allocation7 + $0x148] sm:$0xff] }
 0x196   :  { %569 = vmatpush.msra.mxu3 %v502_v42  ;;  %v494_v46 = vld [vmem:[#allocation7 + $0x108] sm:$0xff]  ;;  %v468_v42 = vld [vmem:[#allocation7 + $0x38] sm:$0xff] }
 0x197   :  { %v378_v51 = vadd.f32 %v377_v48, %v1182_v49  ;;  %v388_v52 = vmul.f32 %v1182_v49, %v1182_v49  ;;  %v496_v48 = vld [vmem:[#allocation7 + $0x118] sm:$0xff]  ;;  %513 = vmatpush.msrb.mxu1 %v494_v46  ;;  %v465_v46 = vld [vmem:[#allocation7 + $0x20] sm:$0xff] }
 0x198   :  { %570 = vmatpush.msra.mxu3 %v499_v45  ;;  %v464_v45 = vld [vmem:[#allocation7 + $0x18] sm:$0xff] }
 0x199   :  { %v379_v53 = vrot.slane %v378_v51, 4  ;;  %v391_v54 = vadd.f32 %v390_v50, %v388_v52  ;;  %v491_v50 = vld [vmem:[#allocation7 + $0xf0] sm:$0xff]  ;;  %v493_v52 = vld [vmem:[#allocation7 + $0x100] sm:$0xff] }
 0x19a   :  { %571 = vmatpush.msra.mxu3 %v496_v48  ;;  %514 = vmatpush.msrb.mxu1 %v491_v50  ;;  %v466_v48 = vld [vmem:[#allocation7 + $0x28] sm:$0xff]  ;;  %v461_v50 = vld [vmem:[#allocation7] sm:$0xff] }
 0x19b   :  { %v380_v55 = vadd.f32 %v379_v53, %v378_v51  ;;  %v392_v56 = vrot.slane %v391_v54, 4  ;;  %v492_v51 = vld [vmem:[#allocation7 + $0xf8] sm:$0xff] }
 0x19c   :  { %543 = vmatpush.msrb.mxu2 %v492_v51  ;;  %572 = vmatpush.msra.mxu3 %v493_v52  ;;  %v488_v53 = vld [vmem:[#allocation7 + $0xd8] sm:$0xff]  ;;  %v462_v51 = vld [vmem:[#allocation7 + $0x8] sm:$0xff] }
 0x19d   :  { %v381_v57 = vrot.slane %v380_v55, 2  ;;  %v393_v58 = vadd.f32 %v392_v56, %v391_v54  ;;  %v489_v54 = vld [vmem:[#allocation7 + $0xe0] sm:$0xff]  ;;  %515 = vmatpush.msrb.mxu1 %v488_v53  ;;  %v463_v53 = vld [vmem:[#allocation7 + $0x10] sm:$0xff] }
 0x19e   :  { %544 = vmatpush.msrb.mxu2 %v489_v54  ;;  %v485_v56 = vld [vmem:[#allocation7 + $0xc0] sm:$0xff] }
 0x19f   :  { %v382_v60 = vadd.f32 %v381_v57, %v380_v55  ;;  %v394_v4 = vrot.slane %v393_v58, 2  ;;  %v490_v55 = vld [vmem:[#allocation7 + $0xe8] sm:$0xff]  ;;  %516 = vmatpush.msrb.mxu1 %v485_v56 }
 0x1a0   :  { %573 = vmatpush.msra.mxu3 %v490_v55  ;;  %v486_v57 = vld [vmem:[#allocation7 + $0xc8] sm:$0xff] }
 0x1a1   :  { %v383_v5 = vrot.slane %v382_v60, 1  ;;  %v395_v8 = vadd.f32 %v394_v4, %v393_v58  ;;  %v487_v58 = vld [vmem:[#allocation7 + $0xd0] sm:$0xff]  ;;  %545 = vmatpush.msrb.mxu2 %v486_v57 }
 0x1a2   :  { %574 = vmatpush.msra.mxu3 %v487_v58  ;;  %v483_v4 = vld [vmem:[#allocation7 + $0xb0] sm:$0xff] }
 0x1a3   :  { %v396_v13 = vrot.slane %v395_v8, 1  ;;  %v384_v14 = vadd.f32 %v383_v5, %v382_v60  ;;  %v482_v60 = vld [vmem:[#allocation7 + $0xa8] sm:$0xff]  ;;  %v484_v5 = vld [vmem:[#allocation7 + $0xb8] sm:$0xff]  ;;  %546 = vmatpush.msrb.mxu2 %v483_v4 }
 0x1a4   :  { %517 = vmatpush.msrb.mxu1 %v482_v60  ;;  %575 = vmatpush.msra.mxu3 %v484_v5 }
 0x1a5   :  { %v397_v19 = vadd.f32 %v396_v13, %v395_v8  ;;  %v479_v8 = vld [vmem:[#allocation7 + $0x90] sm:$0xff]  ;;  %v480_v13 = vld [vmem:[#allocation7 + $0x98] sm:$0xff] }
 0x1a6   :  { %518 = vmatpush.msrb.mxu1 %v479_v8  ;;  %547 = vmatpush.msrb.mxu2 %v480_v13 }
 0x1a7   :  { %v399_v20 = vsel %vm398_vm1, %v384_v14, %v397_v19  ;;  %v481_v14 = vld [vmem:[#allocation7 + $0xa0] sm:$0xff]  ;;  %v476_v19 = vld [vmem:[#allocation7 + $0x78] sm:$0xff] }
 0x1a8   :  { %416 = vmatmul.f32.vlgmr.msrb.gmra.mxu0 %v399_v20  ;;  %576 = vmatpush.msra.mxu3 %v481_v14  ;;  %v477_v20 = vld [vmem:[#allocation7 + $0x80] sm:$0xff] }
 0x1a9   :  { %519 = vmatpush.msrb.mxu1 %v476_v19  ;;  %548 = vmatpush.msrb.mxu2 %v477_v20 }
 0x1aa   :  { %577 = vmatpush.msra.mxu3 %v478_v26 }
 0x1ab   :  { %520 = vmatpush.msrb.mxu1 %v473_v28  ;;  %549 = vmatpush.msrb.mxu2 %v474_v29 }
 0x1ac   :  { %578 = vmatpush.msra.mxu3 %v475_v30 }
 0x1ad   :  { %521 = vmatpush.msrb.mxu1 %v470_v31  ;;  %550 = vmatpush.msrb.mxu2 %v471_v36 }
 0x1ae   :  { %579 = vmatpush.msra.mxu3 %v472_v40 }
 0x1af   :  { %522 = vmatpush.msrb.mxu1 %v467_v41  ;;  %551 = vmatpush.msrb.mxu2 %v468_v42 }
 0x1b0   :  { %580 = vmatpush.msra.mxu3 %v469_v43 }
 0x1b1   :  { %523 = vmatpush.msrb.mxu1 %v464_v45  ;;  %552 = vmatpush.msrb.mxu2 %v465_v46 }
 0x1b2   :  { %581 = vmatpush.msra.mxu3 %v466_v48 }
 0x1b3   :  { %524 = vmatpush.msrb.mxu1 %v461_v50  ;;  %553 = vmatpush.msrb.mxu2 %v462_v51 }
 0x1b4   :  { %582 = vmatpush.msra.mxu3 %v463_v53 }
 0x1b5   :  { %681 = vmatpush.msra.mxu2 %v1119_v6 }
 0x1b7   :  { %682 = vmatpush.msra.mxu2 %v1121_v7  ;;  %v1200_v7 = vld [vmem:[%s1261_s6] ss:$0 sm:$0xff]  ;;  %s991_s6 = smov [#allocation13]  }
 0x1b9   :  { %683 = vmatpush.msra.mxu2 %v1125_v9 }
 0x1bb   :  { %684 = vmatpush.msra.mxu2 %v1128_v10 }
 0x1bd   :  { %685 = vmatpush.msra.mxu2 %v1131_v11 }
 0x1bf   :  { %686 = vmatpush.msra.mxu2 %v1133_v12 }
 0x1c1   :  { %687 = vmatpush.msra.mxu2 %v1137_v15 }
 0x1c3   :  { %688 = vmatpush.msra.mxu2 %v1140_v16 }
 0x1c5   :  { %689 = vmatpush.msra.mxu2 %v1143_v17  ;;  %v1210_v17 = vld [vmem:[%s1262_s7] ss:$0 sm:$0xff]  ;;  %s748_s7 = sshll.u32 %s991_s6, 4  ;;  %s749_s7 = int_to_ptr.vmem [resolvable:$true] %s748_s7 }
 0x1c7   :  { %690 = vmatpush.msra.mxu2 %v1146_v18 }
 0x1c9   :  { %691 = vmatpush.msra.mxu2 %v1149_v21 }
 0x1cb   :  { %692 = vmatpush.msra.mxu2 %v1151_v22 }
 0x1cd   :  { %693 = vmatpush.msra.mxu2 %v1154_v23 }
 0x1cf   :  { %694 = vmatpush.msra.mxu2 %v1157_v24 }
 0x1d1   :  { %695 = vmatpush.msra.mxu2 %v1160_v25 }
 0x1d3   :  { %696 = vmatpush.msra.mxu2 %v1163_v27 }
 0x225   :  { %v417_v44 = vpop.f32.mrf.mxu0 }
 0x226   :  { %v420_v47 = vmul.f32 %v417_v44, %v417_v44  ;;  %v425_v10 = vperm.slane %v417_v44, 0 }
 0x228   :  { %v422_v52 = vrot.slane %v420_v47, 7  ;;  %v426_v16 = vsub.f32 %v1169_v38, %v425_v10  ;;  %v427_v21 = vsub.f32 %v1167_v37, %v425_v10  ;;  %v428_v23 = vsub.f32 %v1171_v39, %v425_v10 }
 0x229   :  { %v429_v25 = vsub.f32 %v1182_v49, %v425_v10 }
 0x22a   :  { %v424_v54 = vsub.f32 %v417_v44, %v422_v52 }
 0x22c   :  { %v430_v55 = vadd.f32 1e-05, %v424_v54 }
 0x22e   :  { %799 = vrsqrt.f32 %v430_v55  ;;  %vm437_vm3 = vweird.f32 %v430_v55 }
 0x234   :  { %v800_v56 = vpop.eup %799 }
 0x235   :  { %v432_v57 = vmul.f32 %v800_v56, %v430_v55  ;;  %vm438_vm2 = vweird.f32 %v800_v56 }
 0x236   :  { %vm439_vm4 = vmor %vm437_vm3, %vm438_vm2 }
 0x237   :  { %v433_v58 = vmul.f32 %v800_v56, %v432_v57 }
 0x239   :  { %v434_v60 = vmul.f32 0.5, %v433_v58 }
 0x23b   :  { %v435_v6 = vsub.f32 1.5, %v434_v60 }
 0x23d   :  { %v436_v9 = vmul.f32 %v800_v56, %v435_v6 }
 0x23f   :  { %v440_v11 = vsel %vm439_vm4, %v800_v56, %v436_v9 }
 0x240   :  { %v444_v12 = vmul.f32 %v1200_v7, %v440_v11 }
 0x242   :  { %v445_v15 = vperm.slane %v444_v12, 1 }
 0x244   :  { %v446_v18 = vmul.f32 %v445_v15, %v426_v16  ;;  %v447_v5 = vmul.f32 %v445_v15, %v427_v21  ;;  %v448_v13 = vmul.f32 %v445_v15, %v428_v23  ;;  %v449_v14 = vmul.f32 %v445_v15, %v429_v25 }
 0x246   :  { %v453_v4 = vadd.f32 %v1210_v17, %v446_v18  ;;  %v454_v38 = vadd.f32 %v1210_v17, %v447_v5  ;;  %v455_v24 = vadd.f32 %v1210_v17, %v448_v13  ;;  %v456_v27 = vadd.f32 %v1210_v17, %v449_v14 }
 0x248   :  { %v457_v22 = vmax.f32 %v453_v4, 0.0  ;;  %v458_v8 = vmax.f32 %v454_v38, 0.0  ;;  %v459_v37 = vmax.f32 %v455_v24, 0.0  ;;  %v460_v19 = vmax.f32 %v456_v27, 0.0 }
 0x24a   :  { %525 = vmatmul.f32.vlgmr.msrb.gmra.mxu1 %v457_v22  ;;  %554 = vmatmul.f32.vlgmr.msrb.gmra.mxu2 %v457_v22 }
 0x24b   :  { %583 = vmatmul.f32.vlgmr.msra.gmra.mxu3 %v457_v22 }
 0x252   :  { %528 = vmatmul.f32.gmra.mxu1 %v458_v8  ;;  %557 = vmatmul.f32.gmra.mxu2 %v458_v8 }
 0x253   :  { %586 = vmatmul.f32.gmra.mxu3 %v458_v8 }
 0x25a   :  { %531 = vmatmul.f32.gmra.mxu1 %v459_v37  ;;  %560 = vmatmul.f32.gmra.mxu2 %v459_v37 }
 0x25b   :  { %589 = vmatmul.f32.gmra.mxu3 %v459_v37 }
 0x262   :  { %534 = vmatmul.f32.gmra.mxu1 %v460_v19  ;;  %563 = vmatmul.f32.gmra.mxu2 %v460_v19 }
 0x263   :  { %592 = vmatmul.f32.gmra.mxu3 %v460_v19 }
 0x2c7   :  { %v526_v39 = vpop.f32.mrf.mxu1 }
 0x2ce   :  { %v584_v20 = vpop.f32.mrf.mxu3 }
 0x2cf   :  { %v529_v26 = vpop.f32.mrf.mxu1 }
 0x2d6   :  { %v587_v28 = vpop.f32.mrf.mxu3 }
 0x2d7   :  { %v532_v29 = vpop.f32.mrf.mxu1 }
 0x2de   :  { %v590_v30 = vpop.f32.mrf.mxu3 }
 0x2df   :  { %v535_v31 = vpop.f32.mrf.mxu1 }
 0x2e0   :  { %608 = vmatpush.msra.mxu0 %v535_v31 }
 0x2e2   :  { %609 = vmatpush.msra.mxu0 %v532_v29 }
 0x2e4   :  { %610 = vmatpush.msra.mxu0 %v529_v26 }
 0x2e6   :  { %v593_v49 = vpop.f32.mrf.mxu3  ;;  %611 = vmatpush.msra.mxu0 %v526_v39 }
 0x2e7   :  { %782 = vmatpush.msra.mxu1 %v593_v49  ;;  %774 = vmatmul.msk.f32.vlgmr.msra.gmra.mxu0 %vm289_vm0, %v1086_v59 }
 0x2e8   :  { %637 = vmatpush.msrb.mxu0 %v593_v49 }
 0x2e9   :  { %783 = vmatpush.msra.mxu1 %v590_v30 }
 0x2ea   :  { %638 = vmatpush.msrb.mxu0 %v590_v30 }
 0x2eb   :  { %784 = vmatpush.msra.mxu1 %v587_v28 }
 0x2ec   :  { %639 = vmatpush.msrb.mxu0 %v587_v28 }
 0x2ed   :  { %785 = vmatpush.msra.mxu1 %v584_v20 }
 0x2ee   :  { %640 = vmatpush.msrb.mxu0 %v584_v20  ;;  %780 = vmatmul.msk.f32.vlgmr.msra.gmra.mxu1 %vm289_vm0, %v1111_v2  ;;  %v555_v2 = vpop.f32.mrf.mxu2 }
 0x2ef   :  { %775 = vmatmul.msk.f32.gmra.mxu0 %vm289_vm0, %v1091_v61 }
 0x2f6   :  { %781 = vmatmul.msk.f32.gmra.mxu1 %vm289_vm0, %v1115_v3  ;;  %v558_v61 = vpop.f32.mrf.mxu2 }
 0x2f7   :  { %776 = vmatmul.msk.f32.gmra.mxu0 %vm289_vm0, %v1095_v62 }
 0x2fe   :  { %v561_v42 = vpop.f32.mrf.mxu2 }
 0x2ff   :  { %777 = vmatmul.msk.f32.gmra.mxu0 %vm289_vm0, %v1099_v63 }
 0x306   :  { %v564_v45 = vpop.f32.mrf.mxu2 }
 0x307   :  { %778 = vmatmul.msk.f32.vlgmr.msrb.gmra.mxu0 %vm289_vm0, %v1103_v0 }
 0x30f   :  { %779 = vmatmul.msk.f32.gmra.mxu0 %vm289_vm0, %v1107_v1 }
 0x364   :  { %v613_v59 = vpop.f32.mrf.mxu0 }
 0x365   :  { %v614_v44 = vadd.f32 %v613_v59, %v555_v2 }
 0x36b   :  { %v648_v3 = vpop.f32.mrf.mxu1 }
 0x36c   :  { %v616_v36 = vpop.f32.mrf.mxu0 }
 0x36d   :  { %v617_v46 = vadd.f32 %v616_v36, %v558_v61 }
 0x373   :  { %v651_v48 = vpop.f32.mrf.mxu1 }
 0x374   :  { %v619_v40 = vpop.f32.mrf.mxu0 }
 0x375   :  { %v620_v62 = vadd.f32 %v619_v40, %v561_v42 }
 0x377   :  { %v656_v50 = vadd.f32 %v648_v3, %v620_v62 }
 0x379   :  { %v669_v55 = vmul.f32 %v656_v50, %v656_v50 }
 0x37c   :  { %v622_v41 = vpop.f32.mrf.mxu0 }
 0x37d   :  { %v623_v63 = vadd.f32 %v622_v41, %v564_v45 }
 0x37f   :  { %v657_v1 = vadd.f32 %v651_v48, %v623_v63 }
 0x381   :  { %v670_v58 = vmul.f32 %v657_v1, %v657_v1 }
 0x384   :  { %v642_v43 = vpop.f32.mrf.mxu0 }
 0x385   :  { %v654_v47 = vadd.f32 %v642_v43, %v614_v44 }
 0x387   :  { %v667_v52 = vmul.f32 %v654_v47, %v654_v47 }
 0x38c   :  { %v645_v0 = vpop.f32.mrf.mxu0 }
 0x38d   :  { %v655_v51 = vadd.f32 %v645_v0, %v617_v46 }
 0x38f   :  { %v658_v53 = vadd.f32 %v655_v51, %v654_v47  ;;  %v668_v54 = vmul.f32 %v655_v51, %v655_v51 }
 0x391   :  { %v659_v56 = vadd.f32 %v658_v53, %v656_v50  ;;  %v671_v57 = vadd.f32 %v668_v54, %v667_v52 }
 0x393   :  { %v660_v60 = vadd.f32 %v659_v56, %v657_v1  ;;  %v672_v6 = vadd.f32 %v671_v57, %v669_v55 }
 0x395   :  { %v661_v9 = vrot.slane %v660_v60, 4  ;;  %v673_v10 = vadd.f32 %v672_v6, %v670_v58 }
 0x397   :  { %v662_v11 = vadd.f32 %v661_v9, %v660_v60  ;;  %v674_v12 = vrot.slane %v673_v10, 4 }
 0x399   :  { %v663_v15 = vrot.slane %v662_v11, 2  ;;  %v675_v16 = vadd.f32 %v674_v12, %v673_v10 }
 0x39b   :  { %v664_v18 = vadd.f32 %v663_v15, %v662_v11  ;;  %v676_v4 = vrot.slane %v675_v16, 2 }
 0x39d   :  { %v665_v21 = vrot.slane %v664_v18, 1  ;;  %v677_v22 = vadd.f32 %v676_v4, %v675_v16 }
 0x39f   :  { %v678_v5 = vrot.slane %v677_v22, 1  ;;  %v666_v38 = vadd.f32 %v665_v21, %v664_v18 }
 0x3a1   :  { %v679_v23 = vadd.f32 %v678_v5, %v677_v22 }
 0x3a3   :  { %v680_v8 = vsel %vm398_vm1, %v666_v38, %v679_v23 }
 0x3a4   :  { %697 = vmatmul.f32.vlgmr.msra.gmra.mxu2 %v680_v8 }
 0x427   :  { %v698_v13 = vpop.f32.mrf.mxu2 }
 0x428   :  { %v701_v24 = vmul.f32 %v698_v13, %v698_v13  ;;  %v706_v28 = vperm.slane %v698_v13, 0 }
 0x42a   :  { %v703_v25 = vrot.slane %v701_v24, 7  ;;  %v707_v49 = vsub.f32 %v654_v47, %v706_v28  ;;  %v708_v59 = vsub.f32 %v655_v51, %v706_v28  ;;  %v709_v2 = vsub.f32 %v656_v50, %v706_v28 }
 0x42b   :  { %v710_v36 = vsub.f32 %v657_v1, %v706_v28 }
 0x42c   :  { %v705_v37 = vsub.f32 %v698_v13, %v703_v25 }
 0x42e   :  { %v711_v14 = vadd.f32 1e-05, %v705_v37 }
 0x430   :  { %801 = vrsqrt.f32 %v711_v14  ;;  %vm718_vm6 = vweird.f32 %v711_v14 }
 0x436   :  { %v802_v27 = vpop.eup %801 }
 0x437   :  { %v713_v19 = vmul.f32 %v802_v27, %v711_v14  ;;  %vm719_vm5 = vweird.f32 %v802_v27 }
 0x438   :  { %vm720_vm7 = vmor %vm718_vm6, %vm719_vm5 }
 0x439   :  { %v714_v39 = vmul.f32 %v802_v27, %v713_v19 }
 0x43b   :  { %v715_v20 = vmul.f32 0.5, %v714_v39 }
 0x43d   :  { %v716_v26 = vsub.f32 1.5, %v715_v20 }
 0x43f   :  { %v717_v29 = vmul.f32 %v802_v27, %v716_v26 }
 0x441   :  { %v721_v30 = vsel %vm720_vm7, %v802_v27, %v717_v29 }
 0x442   :  { %v722_v31 = vmul.f32 %v1200_v7, %v721_v30 }
 0x444   :  { %v723_v40 = vperm.slane %v722_v31, 1 }
 0x446   :  { %v724_v61 = vmul.f32 %v723_v40, %v707_v49  ;;  %v725_v41 = vmul.f32 %v723_v40, %v708_v59  ;;  %v726_v42 = vmul.f32 %v723_v40, %v709_v2  ;;  %v727_v3 = vmul.f32 %v723_v40, %v710_v36 }
 0x448   :  { %v728_v43 = vadd.f32 %v1210_v17, %v724_v61  ;;  %v729_v44 = vadd.f32 %v1210_v17, %v725_v41  ;;  %v730_v62 = vadd.f32 %v1210_v17, %v726_v42  ;;  %v731_v45 = vadd.f32 %v1210_v17, %v727_v3 }
 0x44a   :  { %v732_v46 = vadd.f32 %v728_v43, %v1067_v32  ;;  %v733_v7 = vadd.f32 %v729_v44, %v1071_v33  ;;  %v734_v63 = vadd.f32 %v730_v62, %v1075_v34  ;;  %v735_v47 = vadd.f32 %v731_v45, %v1079_v35 }
 0x44c   :  { %v736_v48 = vmax.f32 %v732_v46, 0.0  ;;  %v737_v0 = vmax.f32 %v733_v7, 0.0  ;;  %v738_v50 = vmax.f32 %v734_v63, 0.0  ;;  %v739_v51 = vmax.f32 %v735_v47, 0.0 }
 0x44e   :  { %740 = vst [vmem:[#allocation13] sm:$0xff] %v736_v48 }
 0x44f   :  { %741 = vst [vmem:[#allocation13 + $0x8] sm:$0xff] %v737_v0 }
 0x450   :  { %742 = vst [vmem:[#allocation13 + $0x10] sm:$0xff] %v738_v50 }
 0x451   :  { %743 = vst [vmem:[#allocation13 + $0x18] sm:$0xff] %v739_v51 }
 0x452   :  { %756 = dma.vmem_to_hbm [thread:$0]  %s749_s7, 512, %s751_s17, [#allocation4], %s985_s1, %s985_s1, %s986_s20  }
 0x453   :  { %979 = dma.done.wait [#allocation4], 512  }
 0x454   :  { %980 = vsyncadd [#allocation4], 4294966784 }
 0x455   :  { %761 = vsyncpa [#allocation3], 1 }
 0x456   :  { %762 = vsyncpa [#allocation6], 1 }
 0x457   :  { %763 = vsyncpa [#allocation9], 1 }
 0x458   :  { %764 = vsyncpa [#allocation12], 1 }
 0x459   :  { %765 = vsyncpa [#allocation4], 1 }

</bundles_post_ra>
